<compile_context>
chip_gen: v6e
topology: v6e:2x2x1
jax: 0.10.0
libtpu: 0.0.40
codegen_flags: <defaults>
</compile_context>

<pallas_src>
import math

import jax
import jax.numpy as jnp
from jax.experimental import pallas as pl
from jax.experimental.pallas import tpu as pltpu

DROPOUT_P = 0.1
# round(0.1 * 2^32) = 429496730 (exact 0.1*2^32 = 429496729.6; keep-prob is
# 0.9 to within 1e-10 — negligible, noted per review).
_DROP_THRESHOLD = int(round(DROPOUT_P * (2 ** 32)))
_KEEP_SCALE = 1.0 / (1.0 - DROPOUT_P)


def _pe_dropout_kernel(seed_ref, x_ref, pe_ref, o_ref):
    """seed_ref: SMEM (1,) int32; x_ref/pe_ref/o_ref: VMEM (TM, L) tiles."""
    tm, lanes = x_ref.shape
    i = pl.program_id(0)

    # --- positional-encoding add (both tiles already lane-dense 2D) ---------
    y = x_ref[...] + pe_ref[...]

    # --- dropout mask from a counter-based hash -----------------------------
    # Unique global element index for every element of this tile, mixed with
    # the user seed -> independent of the tiling, no stream reuse across tiles.
    row = jax.lax.broadcasted_iota(jnp.int32, (tm, lanes), 0).astype(jnp.uint32)
    col = jax.lax.broadcasted_iota(jnp.int32, (tm, lanes), 1).astype(jnp.uint32)
    i_u = i.astype(jnp.uint32)
    seed_u = seed_ref[0].astype(jnp.uint32)

    gidx = (i_u * jnp.uint32(tm) + row) * jnp.uint32(lanes) + col

    # murmur/PCG-style finalizer (adds/xors/shifts/mults only — VPU friendly)
    h = gidx * jnp.uint32(0x9E3779B1) + seed_u * jnp.uint32(0x85EBCA77)
    h = h ^ (h >> 16)
    h = h * jnp.uint32(0x7FEB352D)
    h = h ^ (h >> 15)
    h = h * jnp.uint32(0x846CA68B)
    h = h ^ (h >> 16)

    keep = h >= jnp.uint32(_DROP_THRESHOLD)           # P(keep) = 1 - p
    mask = keep.astype(jnp.float32) * jnp.float32(_KEEP_SCALE)

    o_ref[...] = (y * mask).astype(o_ref.dtype)


def make_positional_encoding(d_model: int, max_len: int = 5000) -> jnp.ndarray:
    """Deterministic PE table, identical math to the torch __init__."""
    position = jnp.arange(max_len, dtype=jnp.float32)[:, None]            # (max_len, 1)
    div_term = jnp.exp(
        jnp.arange(0, d_model, 2, dtype=jnp.float32) * (-math.log(10000.0) / d_model)
    )                                                                     # (d_model/2,)
    pe = jnp.zeros((max_len, d_model), dtype=jnp.float32)
    pe = pe.at[:, 0::2].set(jnp.sin(position * div_term))
    pe = pe.at[:, 1::2].set(jnp.cos(position * div_term))
    return pe


def _choose_row_tile(total_rows: int, pe_period: int, lanes: int,
                     itemsize: int, budget_bytes: int = 4 << 20):
    """Pick rows-per-tile TM with: TM == total_rows, OR
       (TM % 8 == 0, TM divides total_rows, and TM is a multiple of the pe
        period or divides it)."""
    rows_budget = max(1, budget_bytes // (itemsize * lanes))
    if total_rows <= rows_budget:
        return total_rows, 1
    n_periods = total_rows // pe_period
    # Prefer TM = k * pe_period (whole periods per tile), multiple of 8.
    kmax = min(n_periods, rows_budget // pe_period) if pe_period <= rows_budget else 0
    for k in range(kmax, 0, -1):
        tm = k * pe_period
        if n_periods % k == 0 and tm % 8 == 0:
            return tm, total_rows // tm
    # Otherwise sub-tile one period: TM divides pe_period, multiple of 8.
    for tm in range(min(pe_period, rows_budget), 0, -1):
        if pe_period % tm == 0 and tm % 8 == 0:
            return tm, total_rows // tm
    # Last resort: one big tile (soft budget may be exceeded).
    return total_rows, 1


def positional_encoding_forward(x: jnp.ndarray, pe_full: jnp.ndarray, seed: int = 0):
    """x: [B, S, D]. Returns dropout(x + pe[:S], p=0.1), same shape/dtype."""
    B, S, D = x.shape
    pe = pe_full[:S, :].astype(x.dtype)                 # (S, D) glue-side slice

    # ---- lane-dense 2D flattening ------------------------------------------
    if D % 128 == 0:
        lanes, pe_period = D, S
        x2 = x.reshape(B * S, D)
        pe_base = pe
    elif (S * D) % 128 == 0:
        lanes = 128
        pe_period = (S * D) // 128
        x2 = x.reshape(B * pe_period, lanes)
        pe_base = pe.reshape(pe_period, lanes)
    else:
        # fallback: keep D as the lane dim (may be lane-sparse but correct)
        lanes, pe_period = D, S
        x2 = x.reshape(B * S, D)
        pe_base = pe

    total_rows = x2.shape[0]
    tm, num_tiles = _choose_row_tile(total_rows, pe_period, lanes, x2.dtype.itemsize)

    # pe argument: either whole periods tiled up to TM rows, or the base
    # period sub-tiled by the index_map.
    if tm % pe_period == 0:
        pe_arg = jnp.tile(pe_base, (tm // pe_period, 1))        # (TM, lanes)
        n_pe_tiles = 1
    else:                                                       # pe_period % tm == 0
        pe_arg = pe_base                                        # (pe_period, lanes)
        n_pe_tiles = pe_period // tm

    if n_pe_tiles == 1:
        pe_index_map = lambda i: (0, 0)
    else:
        pe_index_map = lambda i: (i % n_pe_tiles, 0)

    seed_arr = jnp.array([seed], dtype=jnp.int32)

    buf_bytes = tm * lanes * x2.dtype.itemsize
    vmem_limit = int(min(max(6 * buf_bytes + (2 << 20), 32 << 20), 48 << 20))

    y2 = pl.pallas_call(
        _pe_dropout_kernel,
        out_shape=jax.ShapeDtypeStruct((total_rows, lanes), x.dtype),
        grid_spec=pltpu.PrefetchScalarGridSpec(
            num_scalar_prefetch=0,
            grid=(num_tiles,),
            in_specs=[
                pl.BlockSpec(memory_space=pltpu.MemorySpace.SMEM),   # seed
                pl.BlockSpec((tm, lanes), lambda i: (i, 0)),         # x rows
                pl.BlockSpec((tm, lanes), pe_index_map),             # pe rows
            ],
            out_specs=pl.BlockSpec((tm, lanes), lambda i: (i, 0)),
        ),
        compiler_params=pltpu.CompilerParams(
            dimension_semantics=("parallel",),
            vmem_limit_bytes=vmem_limit,
        ),
    )(seed_arr, x2, pe_arg)

    return y2.reshape(B, S, D)


if __name__ == "__main__":
    B, S, D = 2, 8, 32          # batch, seq_len, hidden_dim (d_model)
    MAX_LEN = 64

    key = jax.random.PRNGKey(0)
    x = jax.random.normal(key, (B, S, D), dtype=jnp.float32)

    pe_full = make_positional_encoding(D, max_len=MAX_LEN)

    y = positional_encoding_forward(x, pe_full, seed=0)
    y = jax.block_until_ready(y)

    assert y.shape == (B, S, D) and y.dtype == jnp.float32
    # sanity: non-dropped elements must equal (x + pe) / 0.9-scaled values or 0
    assert bool(jnp.all(jnp.isfinite(y)))
    print("KERNEL_OK")
</pallas_src>

<mosaic_0001>
module attributes {stable_mosaic.version = 11 : i64} {
  func.func @_pe_dropout_kernel(%arg0: i32, %arg1: memref<1xi32, #tpu.memory_space<smem>>, %arg2: memref<4x128xf32, #tpu.memory_space<vmem>>, %arg3: memref<4x128xf32, #tpu.memory_space<vmem>>, %arg4: memref<4x128xf32, #tpu.memory_space<vmem>>) attributes {dimension_semantics = [#tpu.dimension_semantics<parallel>], iteration_bounds = array<i64: 1>, scalar_prefetch = 0 : i64, scratch_operands = 0 : i64, tpu.core_type = #tpu.core_type<tc>, window_params = [{transform_indices = @transform_0, window_bounds = array<i64: 1>}, {transform_indices = @transform_1, window_bounds = array<i64: 4, 128>}, {pipeline_mode = #tpu.pipeline_mode<synchronous>, transform_indices = @transform_2, window_bounds = array<i64: 4, 128>}, {transform_indices = @transform_3, window_bounds = array<i64: 4, 128>}]} {
    %c0 = arith.constant 0 : index
    %c0_0 = arith.constant 0 : index
    %0 = vector.load %arg2[%c0, %c0_0] : memref<4x128xf32, #tpu.memory_space<vmem>>, vector<4x128xf32>
    %c0_1 = arith.constant 0 : index
    %c0_2 = arith.constant 0 : index
    %1 = vector.load %arg3[%c0_1, %c0_2] : memref<4x128xf32, #tpu.memory_space<vmem>>, vector<4x128xf32>
    %2 = arith.addf %0, %1 : vector<4x128xf32>
    %3 = tpu.iota {dimensions = array<i32: 0>} : vector<4x128xi32>
    %4 = tpu.iota {dimensions = array<i32: 1>} : vector<4x128xi32>
    %c0_3 = arith.constant 0 : index
    %5 = memref.load %arg1[%c0_3] : memref<1xi32, #tpu.memory_space<smem>>
    %c4_i32 = arith.constant 4 : i32
    %6 = arith.muli %arg0, %c4_i32 : i32
    %7 = vector.broadcast %6 : i32 to vector<4x128xi32>
    %8 = arith.addi %7, %3 : vector<4x128xi32>
    %c128_i32 = arith.constant 128 : i32
    %9 = vector.broadcast %c128_i32 : i32 to vector<4x128xi32>
    %10 = arith.muli %8, %9 : vector<4x128xi32>
    %11 = arith.addi %10, %4 : vector<4x128xi32>
    %c-1640531535_i32 = arith.constant -1640531535 : i32
    %12 = vector.broadcast %c-1640531535_i32 : i32 to vector<4x128xi32>
    %13 = arith.muli %11, %12 : vector<4x128xi32>
    %c-2048144777_i32 = arith.constant -2048144777 : i32
    %14 = arith.muli %5, %c-2048144777_i32 : i32
    %15 = vector.broadcast %14 : i32 to vector<4x128xi32>
    %16 = arith.addi %13, %15 : vector<4x128xi32>
    %c16_i32 = arith.constant 16 : i32
    %17 = vector.broadcast %c16_i32 : i32 to vector<4x128xi32>
    %18 = arith.shrui %16, %17 : vector<4x128xi32>
    %19 = arith.xori %16, %18 : vector<4x128xi32>
    %c2146121005_i32 = arith.constant 2146121005 : i32
    %20 = vector.broadcast %c2146121005_i32 : i32 to vector<4x128xi32>
    %21 = arith.muli %19, %20 : vector<4x128xi32>
    %c15_i32 = arith.constant 15 : i32
    %22 = vector.broadcast %c15_i32 : i32 to vector<4x128xi32>
    %23 = arith.shrui %21, %22 : vector<4x128xi32>
    %24 = arith.xori %21, %23 : vector<4x128xi32>
    %c-2073254261_i32 = arith.constant -2073254261 : i32
    %25 = vector.broadcast %c-2073254261_i32 : i32 to vector<4x128xi32>
    %26 = arith.muli %24, %25 : vector<4x128xi32>
    %c16_i32_4 = arith.constant 16 : i32
    %27 = vector.broadcast %c16_i32_4 : i32 to vector<4x128xi32>
    %28 = arith.shrui %26, %27 : vector<4x128xi32>
    %29 = arith.xori %26, %28 : vector<4x128xi32>
    %c429496730_i32 = arith.constant 429496730 : i32
    %30 = vector.broadcast %c429496730_i32 : i32 to vector<4x128xi32>
    %31 = arith.cmpi uge, %29, %30 : vector<4x128xi32>
    %32 = arith.extui %31 : vector<4x128xi1> to vector<4x128xi32>
    %33 = arith.sitofp %32 : vector<4x128xi32> to vector<4x128xf32>
    %cst = arith.constant 1.11111116 : f32
    %34 = vector.broadcast %cst : f32 to vector<4x128xf32>
    %35 = arith.mulf %33, %34 : vector<4x128xf32>
    %36 = arith.mulf %2, %35 : vector<4x128xf32>
    %c0_5 = arith.constant 0 : index
    %c0_6 = arith.constant 0 : index
    %37 = vector.load %arg4[%c0_5, %c0_6] : memref<4x128xf32, #tpu.memory_space<vmem>>, vector<4x128xf32>
    tpu.vector_store %arg4[%c0_5, %c0_6], %36 {strides = array<i32>} : memref<4x128xf32, #tpu.memory_space<vmem>>, vector<4x128xf32>,
    return
  }
  func.func @transform_0(%arg0: i32) -> i32 {
    %c0_i32 = arith.constant 0 : i32
    %c0_i32_0 = arith.constant 0 : i32
    return %c0_i32 : i32
  }
  func.func @transform_1(%arg0: i32) -> (i32, i32) {
    %c0_i32 = arith.constant 0 : i32
    %c0_i32_0 = arith.constant 0 : i32
    return %arg0, %c0_i32 : i32, i32
  }
  func.func @transform_2(%arg0: i32) -> (i32, i32) {
    %c0_i32 = arith.constant 0 : i32
    %c0_i32_0 = arith.constant 0 : i32
    %c0_i32_1 = arith.constant 0 : i32
    return %c0_i32, %c0_i32_0 : i32, i32
  }
  func.func @transform_3(%arg0: i32) -> (i32, i32) {
    %c0_i32 = arith.constant 0 : i32
    %c0_i32_0 = arith.constant 0 : i32
    return %arg0, %c0_i32 : i32, i32
  }
}

</mosaic_0001>

<bundles_post_ra>
// kernel: tpu_custom_call.1
= control target key start
LH: loop header
LB: loop body
LE: loop exit
PB: predicated region body
PF: predicated region fallthrough
CT: control target
= control target key end

     0   :  { %9 = vsyncpa [#allocation4], 0  ;;  %s194_s0 = inlined_call_operand.<no memory space> [shape: s32[1], index: 0, kind: input, shape index: {}]   ;;  %s195_s1 = inlined_call_operand.hbm [shape: f32[4,128], index: 1, kind: input, shape index: {}]   ;;  %s196_s2 = inlined_call_operand.hbm [shape: f32[4,128], index: 2, kind: input, shape index: {}]   ;;  %s197_s3 = inlined_call_operand.hbm [shape: f32[4,128], index: 3, kind: output, shape index: {}]  }
   0x1   :  { %10 = vsyncpa [#allocation7], 0 }
   0x2   :  { %11 = vsyncpa [#allocation5], 0  ;;  %s158_s12 = smov [#allocation3]   ;;  %s159_s14 = smov [#allocation6]  }
   0x3   :  { %s20_s13 = sshll.u32 %s158_s12, 4  ;;  %s30_s15 = sshll.u32 %s159_s14, 4  ;;  %s21_s13 = int_to_ptr.vmem [resolvable:$true] %s20_s13  ;;  %s31_s15 = int_to_ptr.vmem [resolvable:$true] %s30_s15 }
   0x4   :  { %s100_s16 = scalar_lea.vmem %s21_s13, 64  ;;  %p105_p1 = scmp.lt.s32.totalorder %s21_s13, %s21_s13 }
   0x5   :  { %p101_p0 = scmp.ne.s32.totalorder %s21_s13, %s100_s16  ;;  %p106_p2 = scmp.lt.s32.totalorder %s100_s16, %s100_s16 }
   0x7   :  { %p107_p3 = por %p106_p2, %p105_p1 }
   0x9   :  { %p108_p4 = pnand %p107_p3, %p101_p0 }
   0xb   :  { %111 = shalt.err (!%p108_p4)
}
   0xc   :  { %23 = dma.hbm_to_vmem [thread:$0]  %s195_s1, 64, %s21_s13, [#allocation4]  }
   0xd   :  { %s120_s19 = scalar_lea.vmem %s31_s15, 64  ;;  %p125_p6 = scmp.lt.s32.totalorder %s31_s15, %s31_s15 }
   0xe   :  { %p121_p5 = scmp.ne.s32.totalorder %s31_s15, %s120_s19  ;;  %p126_p7 = scmp.lt.s32.totalorder %s120_s19, %s120_s19 }
  0x10   :  { %p127_p8 = por %p126_p7, %p125_p6 }
  0x12   :  { %p128_p9 = pnand %p127_p8, %p121_p5 }
  0x14   :  { %131 = shalt.err (!%p128_p9)
}
  0x15   :  { %33 = dma.hbm_to_vmem [thread:$0]  %s196_s2, 64, %s31_s15, [#allocation7]  }
  0x16   :  { %152 = dma.done.wait [#allocation4], 64  }
  0x17   :  { %153 = vsyncadd [#allocation4], 4294967232 }
  0x18   :  { %154 = dma.done.wait [#allocation7], 64  }
  0x19   :  { %155 = vsyncadd [#allocation7], 4294967232  ;;  %v43_v0 = vlaneseq  ;;  %s54_s23 = smul.u32 2246822519, %s194_s0  ;;  %v40_v15 = vld [vmem:[#allocation3] sm:$0xf] }
  0x1a   :  { %v41_v16 = vld [vmem:[#allocation6] sm:$0xf]  ;;  %v160_v19 = vmov 0.0   ;;  %s161_s0 = smov [#allocation8]  }
  0x1b   :  { %v44_v1 = vshrl.u32 %v43_v0, 7  ;;  %v46_v2 = vand.u32 127, %v43_v0  ;;  %v55_v5 = vstv %s54_s23  ;;  %v42_v18 = vadd.f32 %v41_v16, %v40_v15  ;;  %s77_s2 = sshll.u32 %s161_s0, 4  ;;  %s78_s2 = int_to_ptr.vmem [resolvable:$true] %s77_s2 }
  0x1c   :  { %s132_s24 = scalar_lea.vmem %s78_s2, 64  ;;  %p137_p11 = scmp.lt.s32.totalorder %s78_s2, %s78_s2 }
  0x1d   :  { %v51_v3 = vmul.u32 128, %v44_v1  ;;  %p133_p10 = scmp.ne.s32.totalorder %s78_s2, %s132_s24  ;;  %p138_p12 = scmp.lt.s32.totalorder %s132_s24, %s132_s24 }
  0x1f   :  { %v52_v4 = vadd.s32 %v51_v3, %v46_v2  ;;  %p139_p13 = por %p138_p12, %p137_p11 }
  0x21   :  { %v53_v6 = vmul.u32 2654435761, %v52_v4  ;;  %p140_p0 = pnand %p139_p13, %p133_p10 }
  0x23   :  { %v56_v7 = vadd.s32 %v55_v5, %v53_v6 }
  0x25   :  { %v57_v8 = vshrl.u32 %v56_v7, 16 }
  0x27   :  { %v58_v9 = vxor.u32 %v57_v8, %v56_v7 }
  0x29   :  { %v59_v10 = vmul.u32 2146121005, %v58_v9 }
  0x2b   :  { %v60_v11 = vshrl.u32 %v59_v10, 15 }
  0x2d   :  { %v61_v12 = vxor.u32 %v60_v11, %v59_v10 }
  0x2f   :  { %v62_v13 = vmul.u32 2221713035, %v61_v12 }
  0x31   :  { %v63_v14 = vshrl.u32 %v62_v13, 16 }
  0x33   :  { %v64_v17 = vxor.u32 %v63_v14, %v62_v13 }
  0x35   :  { %vm65_vm0 = vcmp.ge.u32.totalorder %v64_v17, 429496730 }
  0x36   :  { %v87_v20 = vsel %vm65_vm0, 1.0, %v160_v19 }
  0x37   :  { %v68_v21 = vmul.f32 1.1111112, %v87_v20 }
  0x39   :  { %v69_v22 = vmul.f32 %v68_v21, %v42_v18 }
  0x3b   :  { %70 = vst [vmem:[#allocation8] sm:$0xf] %v69_v22 }
  0x3c   :  { %143 = shalt.err (!%p140_p0)
}
  0x3d   :  { %80 = dma.vmem_to_hbm [thread:$0]  %s78_s2, 64, %s197_s3, [#allocation5]  }
  0x3e   :  { %156 = dma.done.wait [#allocation5], 64  }
  0x3f   :  { %157 = vsyncadd [#allocation5], 4294967232 }
  0x40   :  { %84 = vsyncpa [#allocation4], 1 }
  0x41   :  { %85 = vsyncpa [#allocation7], 1 }
  0x42   :  { %86 = vsyncpa [#allocation5], 1 }

</bundles_post_ra>
